<compile_context>
chip_gen: v5e
topology: v5e:2x2
jax: 0.10.0
libtpu: 0.0.40
codegen_flags: <defaults>
</compile_context>

<pallas_src>
import math

import jax
import jax.numpy as jnp
from jax.experimental import pallas as pl
from jax.experimental.pallas import tpu as pltpu


def _round_up(a: int, b: int) -> int:
    return ((a + b - 1) // b) * b


def _bf16_math_supported() -> bool:
    """bf16 VPU/EUP exists on v6e/v7x; v5e and older stay in f32."""
    try:
        kind = jax.devices()[0].device_kind.lower()
    except Exception:
        return False
    return ("v6" in kind) or ("v7" in kind)


def _make_kde_hist_kernel(ndim: int, neg_k: float, use_bf16: bool):
    """Build the kernel body with static constants closed over."""

    def kde_hist_kernel(x_ref, centers_ref, out_ref):
        # x_ref      : (TN, D)   f32 tile of particles (padded rows = sentinel)
        # centers_ref: (1,  B)   f32 histogram bin centers (grid-resident)
        # out_ref    : (1, 1, B) f32 partial histogram row for this particle half
        @pl.when(pl.program_id(1) == 0)
        def _():
            out_ref[...] = jnp.zeros_like(out_ref)

        xt = x_ref[...]                              # (TN, D)
        c = xt[:, ndim:ndim + 1]                     # (TN, 1) selected coordinate
        d = c - centers_ref[...]                     # (TN, B) f32 broadcast
        if use_bf16:
            # EUP is the binding unit; packed bf16 doubles exp throughput.
            d = d.astype(jnp.bfloat16)
        w = jnp.exp((d * d) * neg_k)                 # Gaussian kernel weights
        # Accumulate in f32 regardless of the exp dtype.
        w_sum = jnp.sum(w.astype(jnp.float32), axis=0, keepdims=True)   # (1, B)
        out_ref[...] += w_sum.reshape(out_ref.shape)

    return kde_hist_kernel


class Diagnostic:
    """JAX/Pallas port of mentflow's Diagnostic (Histogram1D / KDE semantics)."""

    _NUM_SPLITS = 2      # leading "parallel" grid axis (both TensorCores on v7x)
    _TN = 2048           # particle tile (sublane axis); multiple of 8
    _PAD_VALUE = 1.0e6   # sentinel: exp(-k * (sentinel - center)^2) == 0 exactly

    def __init__(self, seed: int = None, ndim: int = 0,
                 bins: int = 128, xmax: float = 3.0, bandwidth: float = 0.25):
        self.seed = seed
        self.ndim = 0 if ndim is None else ndim     # which coordinate to project
        self.bins = bins
        self.xmax = xmax
        self.bandwidth = bandwidth
        # Deterministic "parameters": fixed histogram bin centers.
        self.bin_centers = jnp.linspace(-xmax, xmax, bins, dtype=jnp.float32)
        self._use_bf16 = _bf16_math_supported()

    def __call__(self, x: jnp.ndarray) -> jnp.ndarray:
        # x: (N, D) particle coordinates.
        x = jnp.asarray(x, dtype=jnp.float32)
        n, d = x.shape

        ns = self._NUM_SPLITS
        # Adapt the tile down for small problems; keep it a multiple of 8.
        tn = min(self._TN, max(8, _round_up(_round_up(n, ns) // ns, 8)))
        n_pad = _round_up(n, ns * tn)
        tiles_per_split = n_pad // (ns * tn)

        if n_pad != n:
            x = jnp.pad(x, ((0, n_pad - n), (0, 0)),
                        constant_values=self._PAD_VALUE)

        centers = self.bin_centers.reshape(1, self.bins)            # (1, B)
        neg_k = -0.5 / float(self.bandwidth) ** 2
        kernel = _make_kde_hist_kernel(self.ndim, neg_k, self._use_bf16)

        partial = pl.pallas_call(
            kernel,
            out_shape=jax.ShapeDtypeStruct((ns, 1, self.bins), jnp.float32),
            grid_spec=pltpu.PrefetchScalarGridSpec(
                num_scalar_prefetch=0,
                grid=(ns, tiles_per_split),
                in_specs=[
                    # full rows of x; column selection fused into the kernel
                    pl.BlockSpec((tn, d),
                                 lambda s, j: (s * tiles_per_split + j, 0)),
                    # bin centers, grid-resident
                    pl.BlockSpec((1, self.bins), lambda s, j: (0, 0)),
                ],
                out_specs=pl.BlockSpec((1, 1, self.bins),
                                       lambda s, j: (s, 0, 0)),
            ),
            compiler_params=pltpu.CompilerParams(
                dimension_semantics=("parallel", "arbitrary"),
            ),
        )(x, centers)

        # Sum the per-core partial rows and normalize by the *true* N.
        norm = 1.0 / (float(n) * float(self.bandwidth) * math.sqrt(2.0 * math.pi))
        return partial.reshape(ns, self.bins).sum(axis=0) * norm


def _reference_hist(x, ndim, bin_centers, bandwidth):
    """Pure-JAX f32 reference for the KDE histogram."""
    coords = x[:, ndim].astype(jnp.float32)
    z = (coords[:, None] - bin_centers[None, :]) / bandwidth
    w = jnp.exp(-0.5 * z * z)
    n = coords.shape[0]
    return jnp.sum(w, axis=0) / (n * bandwidth * math.sqrt(2.0 * math.pi))


if __name__ == "__main__":
    key = jax.random.PRNGKey(0)
    N, D = 250, 4   # non-multiple of the tile to exercise the padding path
    x = jax.random.normal(key, (N, D), dtype=jnp.float32)

    diag = Diagnostic(seed=0, ndim=1)
    hist = jax.block_until_ready(diag(x))

    ref = _reference_hist(x, diag.ndim, diag.bin_centers, diag.bandwidth)
    assert hist.shape == (diag.bins,)

    if diag._use_bf16:
        rtol, atol = 5e-2, 2e-3   # bf16 exp path (v6e/v7x)
    else:
        rtol, atol = 1e-4, 1e-5   # pure f32 path (v5e / unknown)
    assert jnp.allclose(hist, ref, rtol=rtol, atol=atol), "mismatch vs reference"

    print("KERNEL_OK")
</pallas_src>

<mosaic_0001>
module attributes {stable_mosaic.version = 11 : i64} {
  func.func @kde_hist_kernel(%arg0: i32, %arg1: i32, %arg2: memref<128x4xf32, #tpu.memory_space<vmem>>, %arg3: memref<1x128xf32, #tpu.memory_space<vmem>>, %arg4: memref<1x1x128xf32, #tpu.memory_space<vmem>>) attributes {dimension_semantics = [#tpu.dimension_semantics<parallel>, #tpu.dimension_semantics<arbitrary>], iteration_bounds = array<i64: 2, 1>, scalar_prefetch = 0 : i64, scratch_operands = 0 : i64, tpu.core_type = #tpu.core_type<tc>, window_params = [{transform_indices = @transform_0, window_bounds = array<i64: 128, 4>}, {pipeline_mode = #tpu.pipeline_mode<synchronous>, transform_indices = @transform_1, window_bounds = array<i64: 1, 128>}, {transform_indices = @transform_2, window_bounds = array<i64: 1, 1, 128>}]} {
    %c0_i32 = arith.constant 0 : i32
    %0 = arith.cmpi eq, %arg1, %c0_i32 : i32
    %1 = arith.extui %0 : i1 to i32
    %c0_i32_0 = arith.constant 0 : i32
    %2 = arith.cmpi ne, %1, %c0_i32_0 : i32
    scf.if %2 {
      %cst_11 = arith.constant 0.000000e+00 : f32
      %19 = vector.broadcast %cst_11 : f32 to vector<1x1x128xf32>
      %c0_12 = arith.constant 0 : index
      %c0_13 = arith.constant 0 : index
      %c0_14 = arith.constant 0 : index
      %20 = vector.load %arg4[%c0_12, %c0_13, %c0_14] : memref<1x1x128xf32, #tpu.memory_space<vmem>>, vector<1x1x128xf32>
      tpu.vector_store %arg4[%c0_12, %c0_13, %c0_14], %19 {strides = array<i32>} : memref<1x1x128xf32, #tpu.memory_space<vmem>>, vector<1x1x128xf32>,
    } else {
    }
    %c0 = arith.constant 0 : index
    %c0_1 = arith.constant 0 : index
    %3 = vector.load %arg2[%c0, %c0_1] : memref<128x4xf32, #tpu.memory_space<vmem>>, vector<128x4xf32>
    %4 = vector.extract_strided_slice %3 {offsets = [0, 1], sizes = [128, 1], strides = [1, 1]} : vector<128x4xf32> to vector<128x1xf32>
    %c0_2 = arith.constant 0 : index
    %c0_3 = arith.constant 0 : index
    %5 = vector.load %arg3[%c0_2, %c0_3] : memref<1x128xf32, #tpu.memory_space<vmem>>, vector<1x128xf32>
    %6 = vector.broadcast %4 : vector<128x1xf32> to vector<128x128xf32>
    %7 = vector.broadcast %5 : vector<1x128xf32> to vector<128x128xf32>
    %8 = arith.subf %6, %7 : vector<128x128xf32>
    %9 = arith.mulf %8, %8 : vector<128x128xf32>
    %cst = arith.constant -8.000000e+00 : f32
    %10 = vector.broadcast %cst : f32 to vector<128x128xf32>
    %11 = arith.mulf %9, %10 : vector<128x128xf32>
    %12 = math.exp %11 : vector<128x128xf32>
    %cst_4 = arith.constant dense<0.000000e+00> : vector<128xf32>
    %13 = vector.multi_reduction <add>, %12, %cst_4 [0] : vector<128x128xf32> to vector<128xf32>
    %14 = vector.shape_cast %13 : vector<128xf32> to vector<1x128xf32>
    %c0_5 = arith.constant 0 : index
    %c0_6 = arith.constant 0 : index
    %c0_7 = arith.constant 0 : index
    %15 = vector.load %arg4[%c0_5, %c0_6, %c0_7] : memref<1x1x128xf32, #tpu.memory_space<vmem>>, vector<1x1x128xf32>
    %16 = vector.shape_cast %14 : vector<1x128xf32> to vector<1x1x128xf32>
    %17 = arith.addf %15, %16 : vector<1x1x128xf32>
    %c0_8 = arith.constant 0 : index
    %c0_9 = arith.constant 0 : index
    %c0_10 = arith.constant 0 : index
    %18 = vector.load %arg4[%c0_8, %c0_9, %c0_10] : memref<1x1x128xf32, #tpu.memory_space<vmem>>, vector<1x1x128xf32>
    tpu.vector_store %arg4[%c0_8, %c0_9, %c0_10], %17 {strides = array<i32>} : memref<1x1x128xf32, #tpu.memory_space<vmem>>, vector<1x1x128xf32>,
    return
  }
  func.func @transform_0(%arg0: i32, %arg1: i32) -> (i32, i32) {
    %c1_i32 = arith.constant 1 : i32
    %0 = arith.muli %arg0, %c1_i32 : i32
    %1 = arith.addi %0, %arg1 : i32
    %c0_i32 = arith.constant 0 : i32
    %c0_i32_0 = arith.constant 0 : i32
    return %1, %c0_i32 : i32, i32
  }
  func.func @transform_1(%arg0: i32, %arg1: i32) -> (i32, i32) {
    %c0_i32 = arith.constant 0 : i32
    %c0_i32_0 = arith.constant 0 : i32
    %c0_i32_1 = arith.constant 0 : i32
    return %c0_i32, %c0_i32_0 : i32, i32
  }
  func.func @transform_2(%arg0: i32, %arg1: i32) -> (i32, i32, i32) {
    %c0_i32 = arith.constant 0 : i32
    %c0_i32_0 = arith.constant 0 : i32
    %c0_i32_1 = arith.constant 0 : i32
    return %arg0, %c0_i32, %c0_i32_0 : i32, i32, i32
  }
}

</mosaic_0001>

<bundles_post_ra>
// kernel: tpu_custom_call.1
= control target key start
LH: loop header
LB: loop body
LE: loop exit
PB: predicated region body
PF: predicated region fallthrough
CT: control target
= control target key end

     0   :  { %7 = vsyncpa [#allocation3], 0  ;;  %s791_s0 = inlined_call_operand.vmem [shape: f32[256,4], index: 0, kind: input, shape index: {}]   ;;  %s792_s1 = inlined_call_operand.vmem [shape: f32[1,128], index: 1, kind: input, shape index: {}]   ;;  %s793_s2 = inlined_call_operand.hbm [shape: f32[2,1,128], index: 2, kind: output, shape index: {}]  }
   0x1   :  { %9 = vsyncpa [#allocation3 + $0x1], 0  ;;  %s646_s9 = smov 0   ;;  %s648_s10 = smov 0  }
   0x2   :  { %s650_s11 = smov 0   ;;  %s652_s12 = smov 0  }
   0x3   :  { %s654_s13 = smov 0   ;;  %s656_s14 = smov 0  }
   0x4 LB: > { %s447_s15 = sadd.s32 4294967295, %s627_s14   ;;  %s448_s16 = sadd.s32 4294967294, %s627_s14   ;;  %s627_s14 = sphi %s656_s14, %s15_s14   ;;  %s623_s13 = sphi %s654_s13, %s800_s13   ;;  %s619_s12 = sphi %s652_s12, %s799_s12   ;;  %s615_s11 = sphi %s650_s11, %s798_s11   ;;  %s611_s10 = sphi %s648_s10, %s797_s10   ;;  %s607_s9 = sphi %s646_s9, %s796_s9  }
   0x5   : > { %s27_s17 = sadd.s32 1, %s623_s13  ;;  %s83_s18 = sadd.s32 1, %s615_s11 }
   0x6   : > { %p29_p0 = scmp.ge.s32.totalorder %s27_s17, 2  ;;  %p93_p1 = scmp.ne.s32.totalorder %s615_s11, %s611_s10 }
   0x7   : > { %p94_p2 = scmp.eq.s32.totalorder %s447_s15, 1  ;;  %p99_p3 = scmp.ne.s32.totalorder %s611_s10, %s607_s9 }
   0x8   : > { %s802_s17 = smov (%p29_p0, %s27_s17), 0  ;;  %p100_p5 = scmp.eq.s32.totalorder %s448_s16, 1 }
   0x9   : > { %p686_p4 = por %p94_p2, %p93_p1  ;;  %s80_s20 = ssub.s32 %s623_s13, %s802_s17 }
   0xa   : > { %p451_p6 = scmp.ge.s32.totalorder %s627_s14, 1  ;;  %p81_p7 = scmp.eq.s32.totalorder %s80_s20, 0 }
   0xb   : > { %p693_p8 = por %p100_p5, %p99_p3  ;;  %p132_p9 = scmp.lt.s32.totalorder %s627_s14, 3 }
   0xc   : > { %s699_s22 = scalar_select %p81_p7, %s615_s11, %s83_s18  }
   0xd   : > { %p133_p10 = pnand %p451_p6, %p132_p9 }
   0xe   : > { %s452_s23 = sshll.u32 (!%p133_p10), %s619_s12, 4  ;;  %s152_s30 = sand.u32 (!%p133_p10), 1, %s611_s10  }
   0xf   : > { %136 = sbr.rel (%p133_p10) target bundleno = 214 (0xd6), region = 28  ;;  %p156_p11 = scmp.lt.s32.totalorder (!%p133_p10), %s452_s23, 31 }
  0x10   : > { %s744_s3 = scalar_lea.vmem (!%p133_p10), [#allocation2], %s152_s30  ;;  %s380_s6 = scalar_lea.hbm (!%p133_p10), %s793_s2, %s619_s12 }
  0x11   : > { %s382_s7 = sshll.u32 (!%p133_p10), %s744_s3, 4  ;;  %s384_s8 = sshll.u32 (!%p133_p10), %s380_s6, 4  ;;  %s383_s7 = int_to_ptr.vmem [resolvable:$true] %s382_s7  ;;  %s385_s8 = int_to_ptr.hbm [resolvable:$true] %s384_s8 }
  0x12   : > { %s372_s15 = scalar_lea.sflag (!%p133_p10), [#allocation3], %s152_s30  ;;  %s563_s16 = sshra.s32 (!%p133_p10), %s385_s8, 4  ;;  %s564_s16 = int_to_ptr.hbm [resolvable:$true] %s563_s16 }
  0x13   : > { %s565_s18 = scalar_lea.hbm (!%p133_p10), %s564_s16, 1  ;;  %p570_p1 = scmp.lt.s32.totalorder (!%p133_p10), %s564_s16, %s793_s2 }
  0x14   : > { %v629_v0 = vmov 1   ;;  %s804_s23 = smov (!%p156_p11, %s452_s23), 31  ;;  %v726_v18 = vld [vmem:[%s792_s1] ss:$0 sm:$0xff]  ;;  %p566_p12 = scmp.ne.s32.totalorder %s564_s16, %s565_s18 }
  0x15   : > { %515 = vset.pattern.permute.xlu2 %v629_v0  ;;  %514 = vset.pattern.permute.xlu1 %v629_v0  ;;  %s453_s24 = sshll.u32 %s804_s23, 3  ;;  %s569_s23 = scalar_lea.hbm %s793_s2, 2 }
  0x16   : > { %513 = vset.pattern.permute.xlu0 %v629_v0  ;;  %s705_s27 = scalar_lea.vmem %s791_s0, %s453_s24  ;;  %p567_p13 = pnand %p566_p12, %p686_p4 }
  0x17   : > { %v171_v1 = vld [vmem:[%s705_s27 + $0x20] sm:$0xff]  ;;  %v169_v2 = vld [vmem:[%s705_s27 + $0x10] sm:$0xff]  ;;  %v172_v4 = vld [vmem:[%s705_s27 + $0x28] sm:$0xff]  ;;  %p571_p2 = scmp.lt.s32.totalorder %s569_s23, %s565_s18 }
  0x18   : > { %v167_v3 = vld [vmem:[%s705_s27] sm:$0xff]  ;;  %206 = vperm.xlu2 %515, %v171_v1   ;;  %196 = vperm.xlu1 %514, %v169_v2   ;;  %v170_v5 = vld [vmem:[%s705_s27 + $0x18] sm:$0xff]  ;;  %v168_v6 = vld [vmem:[%s705_s27 + $0x8] sm:$0xff]  ;;  %p568_p0 = pneg %p567_p13 }
  0x19   : > { %186 = vperm.xlu0 %513, %v167_v3   ;;  %v175_v7 = vld [vmem:[%s705_s27 + $0x40] sm:$0xff]  ;;  %v174_v8 = vld [vmem:[%s705_s27 + $0x38] sm:$0xff]  ;;  %v173_v9 = vld [vmem:[%s705_s27 + $0x30] sm:$0xff]  ;;  %p572_p3 = por %p571_p2, %p570_p1 }
  0x1a   : > { %v178_v10 = vld [vmem:[%s705_s27 + $0x58] sm:$0xff]  ;;  %v177_v11 = vld [vmem:[%s705_s27 + $0x50] sm:$0xff]  ;;  %v176_v12 = vld [vmem:[%s705_s27 + $0x48] sm:$0xff] }
  0x1b   : > { %v181_v13 = vld [vmem:[%s705_s27 + $0x70] sm:$0xff]  ;;  %v180_v14 = vld [vmem:[%s705_s27 + $0x68] sm:$0xff]  ;;  %v179_v15 = vld [vmem:[%s705_s27 + $0x60] sm:$0xff]  ;;  %p573_p5 = pnand %p572_p3, %p568_p0 }
  0x1c   : > { %v182_v16 = vld [vmem:[%s705_s27 + $0x78] sm:$0xff] }
  0x20   : > { %211 = vperm.xlu2 %515, %v172_v4   ;;  %201 = vperm.xlu1 %514, %v170_v5  }
  0x21   : > { %191 = vperm.xlu0 %513, %v168_v6  }
  0x28   : > { %226 = vperm.xlu2 %515, %v175_v7   ;;  %221 = vperm.xlu1 %514, %v174_v8  }
  0x29   : > { %216 = vperm.xlu0 %513, %v173_v9  }
  0x30   : > { %241 = vperm.xlu2 %515, %v178_v10   ;;  %236 = vperm.xlu1 %514, %v177_v11  }
  0x31   : > { %231 = vperm.xlu0 %513, %v176_v12  }
  0x38   : > { %256 = vperm.xlu2 %515, %v181_v13   ;;  %251 = vperm.xlu1 %514, %v180_v14  }
  0x39   : > { %246 = vperm.xlu0 %513, %v179_v15  }
  0x41   : > { %261 = vperm.xlu0 %513, %v182_v16  }
  0x72   : > { %v207_v17 = vpop.permute.xlu2 %206 }
  0x73   : > { %v271_v26 = vsub.f32 %v207_v17, %v726_v18 }
  0x75   : > { %v287_v36 = vmul.f32 %v271_v26, %v271_v26 }
  0x77   : > { %v303_v44 = vmul.f32 -8.0, %v287_v36 }
  0x79   : > { %v323_v55 = vmul.f32 1.442695, %v303_v44 }
  0x7a   : > { %v212_v19 = vpop.permute.xlu2 %211 }
  0x7b   : > { %v272_v33 = vsub.f32 %v212_v19, %v726_v18 }
  0x7d   : > { %v288_v40 = vmul.f32 %v272_v33, %v272_v33 }
  0x7f   : > { %v304_v50 = vmul.f32 -8.0, %v288_v40 }
  0x81   : > { %v325_v58 = vmul.f32 1.442695, %v304_v50 }
  0x82   : > { %v227_v27 = vpop.permute.xlu2 %226 }
  0x83   : > { %v275_v45 = vsub.f32 %v227_v27, %v726_v18 }
  0x85   : > { %v291_v56 = vmul.f32 %v275_v45, %v275_v45 }
  0x87   : > { %v307_v0 = vmul.f32 -8.0, %v291_v56 }
  0x89   : > { %v331_v13 = vmul.f32 1.442695, %v307_v0 }
  0x8a   : > { %v197_v20 = vpop.permute.xlu1 %196  ;;  %v242_v51 = vpop.permute.xlu2 %241 }
  0x8b   : > { %v187_v21 = vpop.permute.xlu0 %186  ;;  %v269_v23 = vsub.f32 %v197_v20, %v726_v18  ;;  %v278_v59 = vsub.f32 %v242_v51, %v726_v18 }
  0x8c   : > { %v267_v22 = vsub.f32 %v187_v21, %v726_v18 }
  0x8d   : > { %v285_v28 = vmul.f32 %v269_v23, %v269_v23  ;;  %v294_v7 = vmul.f32 %v278_v59, %v278_v59 }
  0x8e   : > { %v283_v24 = vmul.f32 %v267_v22, %v267_v22 }
  0x8f   : > { %v301_v37 = vmul.f32 -8.0, %v285_v28  ;;  %v310_v20 = vmul.f32 -8.0, %v294_v7 }
  0x90   : > { %v299_v31 = vmul.f32 -8.0, %v283_v24 }
  0x91   : > { %v319_v46 = vmul.f32 1.442695, %v301_v37  ;;  %v337_v33 = vmul.f32 1.442695, %v310_v20 }
  0x92   : > { %v202_v25 = vpop.permute.xlu1 %201  ;;  %v315_v38 = vmul.f32 1.442695, %v299_v31  ;;  %v257_v14 = vpop.permute.xlu2 %256 }
  0x93   : > { %v270_v29 = vsub.f32 %v202_v25, %v726_v18  ;;  %v192_v30 = vpop.permute.xlu0 %191  ;;  %v281_v21 = vsub.f32 %v257_v14, %v726_v18  ;;  %v630_v25 = vmov 0.0  }
  0x94   : > { %v268_v32 = vsub.f32 %v192_v30, %v726_v18  ;;  %517 = vpow2.f32 %v315_v38  ;;  %166 = vst [vmem:[%s744_s3] sm:$0x1] %v630_v25 }
  0x95   : > { %v286_v34 = vmul.f32 %v270_v29, %v270_v29 }
  0x96   : > { %v284_v35 = vmul.f32 %v268_v32, %v268_v32 }
  0x97   : > { %v302_v41 = vmul.f32 -8.0, %v286_v34 }
  0x98   : > { %v300_v39 = vmul.f32 -8.0, %v284_v35  ;;  %v297_v35 = vmul.f32 %v281_v21, %v281_v21 }
  0x99   : > { %v321_v52 = vmul.f32 1.442695, %v302_v41 }
  0x9a   : > { %v317_v42 = vmul.f32 1.442695, %v300_v39  ;;  %v222_v43 = vpop.permute.xlu1 %221  ;;  %v518_v61 = vpop.eup %517  ;;  %v313_v44 = vmul.f32 -8.0, %v297_v35 }
  0x9b   : > { %v274_v47 = vsub.f32 %v222_v43, %v726_v18  ;;  %v217_v48 = vpop.permute.xlu0 %216  ;;  %v368_v7 = vld [vmem:[%s744_s3] sm:$0x1] }
  0x9c   : > { %v273_v49 = vsub.f32 %v217_v48, %v726_v18  ;;  %519 = vpow2.f32 %v317_v42 }
  0x9d   : > { %v290_v53 = vmul.f32 %v274_v47, %v274_v47  ;;  %521 = vpow2.f32 %v319_v46 }
  0x9e   : > { %v289_v54 = vmul.f32 %v273_v49, %v273_v49  ;;  %523 = vpow2.f32 %v321_v52  ;;  %v343_v52 = vmul.f32 1.442695, %v313_v44 }
  0x9f   : > { %v306_v60 = vmul.f32 -8.0, %v290_v53  ;;  %525 = vpow2.f32 %v323_v55 }
  0xa0   : > { %v305_v57 = vmul.f32 -8.0, %v289_v54  ;;  %527 = vpow2.f32 %v325_v58 }
  0xa1   : > { %v329_v8 = vmul.f32 1.442695, %v306_v60 }
  0xa2   : > { %v237_v62 = vpop.permute.xlu1 %236  ;;  %v520_v63 = vpop.eup %519  ;;  %v327_v1 = vmul.f32 1.442695, %v305_v57 }
  0xa3   : > { %v277_v2 = vsub.f32 %v237_v62, %v726_v18  ;;  %v232_v3 = vpop.permute.xlu0 %231  ;;  %v347_v4 = vadd.f32 %v520_v63, %v518_v61  ;;  %v522_v6 = vpop.eup %521 }
  0xa4   : > { %v276_v5 = vsub.f32 %v232_v3, %v726_v18  ;;  %v524_v12 = vpop.eup %523  ;;  %529 = vpow2.f32 %v327_v1 }
  0xa5   : > { %v293_v9 = vmul.f32 %v277_v2, %v277_v2  ;;  %v348_v10 = vadd.f32 %v522_v6, %v347_v4  ;;  %v526_v19 = vpop.eup %525  ;;  %531 = vpow2.f32 %v329_v8 }
  0xa6   : > { %v292_v11 = vmul.f32 %v276_v5, %v276_v5  ;;  %v528_v26 = vpop.eup %527  ;;  %533 = vpow2.f32 %v331_v13 }
  0xa7   : > { %v309_v15 = vmul.f32 -8.0, %v293_v9  ;;  %v349_v16 = vadd.f32 %v524_v12, %v348_v10 }
  0xa8   : > { %v308_v17 = vmul.f32 -8.0, %v292_v11 }
  0xa9   : > { %v350_v22 = vadd.f32 %v526_v19, %v349_v16  ;;  %v335_v27 = vmul.f32 1.442695, %v309_v15 }
  0xaa   : > { %v333_v23 = vmul.f32 1.442695, %v308_v17  ;;  %v252_v24 = vpop.permute.xlu1 %251  ;;  %v530_v32 = vpop.eup %529 }
  0xab   : > { %v280_v28 = vsub.f32 %v252_v24, %v726_v18  ;;  %v247_v29 = vpop.permute.xlu0 %246  ;;  %v351_v30 = vadd.f32 %v528_v26, %v350_v22  ;;  %v532_v38 = vpop.eup %531 }
  0xac   : > { %535 = vpow2.f32 %v333_v23  ;;  %v279_v31 = vsub.f32 %v247_v29, %v726_v18  ;;  %v534_v42 = vpop.eup %533 }
  0xad   : > { %v296_v34 = vmul.f32 %v280_v28, %v280_v28  ;;  %v352_v36 = vadd.f32 %v530_v32, %v351_v30  ;;  %537 = vpow2.f32 %v335_v27 }
  0xae   : > { %v295_v37 = vmul.f32 %v279_v31, %v279_v31  ;;  %539 = vpow2.f32 %v337_v33 }
  0xaf   : > { %v312_v39 = vmul.f32 -8.0, %v296_v34  ;;  %v353_v40 = vadd.f32 %v532_v38, %v352_v36 }
  0xb0   : > { %v311_v41 = vmul.f32 -8.0, %v295_v37 }
  0xb1   : > { %v354_v45 = vadd.f32 %v534_v42, %v353_v40  ;;  %v341_v46 = vmul.f32 1.442695, %v312_v39 }
  0xb2   : > { %v536_v43 = vpop.eup %535  ;;  %v339_v47 = vmul.f32 1.442695, %v311_v41 }
  0xb3   : > { %v262_v48 = vpop.permute.xlu0 %261  ;;  %v355_v49 = vadd.f32 %v536_v43, %v354_v45  ;;  %v538_v51 = vpop.eup %537 }
  0xb4   : > { %541 = vpow2.f32 %v339_v47  ;;  %v282_v50 = vsub.f32 %v262_v48, %v726_v18  ;;  %v540_v55 = vpop.eup %539 }
  0xb5   : > { %v356_v53 = vadd.f32 %v538_v51, %v355_v49  ;;  %543 = vpow2.f32 %v341_v46 }
  0xb6   : > { %v298_v54 = vmul.f32 %v282_v50, %v282_v50  ;;  %545 = vpow2.f32 %v343_v52 }
  0xb7   : > { %v357_v57 = vadd.f32 %v540_v55, %v356_v53 }
  0xb8   : > { %v314_v56 = vmul.f32 -8.0, %v298_v54 }
  0xba   : > { %v542_v58 = vpop.eup %541  ;;  %v345_v59 = vmul.f32 1.442695, %v314_v56 }
  0xbb   : > { %v358_v60 = vadd.f32 %v542_v58, %v357_v57  ;;  %v544_v61 = vpop.eup %543 }
  0xbc   : > { %547 = vpow2.f32 %v345_v59  ;;  %v546_v63 = vpop.eup %545 }
  0xbd   : > { %v359_v62 = vadd.f32 %v544_v61, %v358_v60 }
  0xbf   : > { %v360_v18 = vadd.f32 %v546_v63, %v359_v62 }
  0xc2   : > { %v548_v0 = vpop.eup %547 }
  0xc3   : > { %v361_v1 = vadd.f32 %v548_v0, %v360_v18 }
  0xc5   : > { %v362_v2 = vrot.slane %v361_v1, 4 }
  0xc7   : > { %v363_v3 = vadd.f32 %v362_v2, %v361_v1 }
  0xc9   : > { %v364_v4 = vrot.slane %v363_v3, 2 }
  0xcb   : > { %v365_v5 = vadd.f32 %v364_v4, %v363_v3 }
  0xcd   : > { %v366_v6 = vrot.slane %v365_v5, 1 }
  0xcf   : > { %v367_v8 = vadd.f32 %v366_v6, %v365_v5 }
  0xd1   : > { %v369_v9 = vadd.f32 %v368_v7, %v367_v8 }
  0xd3   : > { %370 = vst [vmem:[%s744_s3] sm:$0x1] %v369_v9 }
  0xd4   : > { %576 = shalt.err (!%p573_p5)
}
  0xd5   : > { %456 = dma.vmem_to_hbm [thread:$0]  (%p686_p4), %s383_s7, 16, %s385_s8, %s372_s15  }
  0xd6 PF: > { %p462_p6 = scmp.ge.s32.totalorder %s627_s14, 2  ;;  %s396_s26 = sand.u32 1, %s607_s9  }
  0xd7   : > { %s397_s27 = scalar_lea.sflag [#allocation3], %s396_s26 }
  0xd8   : > { %p459_p7 = pnand %p462_p6, %p693_p8 }
  0xda   : > { %p460_p9 = pneg %p459_p7 }
  0xdc   : > { %602 = dma.done.wait (%p460_p9), %s397_s27, 16  }
  0xdd   : > { %604 = vsyncadd (%p460_p9), %s397_s27, 4294967280  ;;  %s15_s14 = sadd.s32 1, %s627_s14   ;;  %s796_s9 = smov %s611_s10 }
  0xde   : > { %p12_p10 = scmp.ge.s32.totalorder %s15_s14, 4   ;;  %s797_s10 = smov %s615_s11 }
  0xdf   : > { %s798_s11 = smov %s699_s22  ;;  %s799_s12 = smov %s623_s13 }
  0xe0   : > { %s800_s13 = smov %s802_s17  ;;  %14 = sbr.rel (!%p12_p10) target bundleno = 4 (0x4), region = 67 }
  0xe5   :  { %402 = vsyncpa [#allocation3], 1 }
  0xe6   :  { %404 = vsyncpa [#allocation3 + $0x1], 1 }

</bundles_post_ra>
